<compile_context>
chip_gen: v5e
topology: v5e:2x2
jax: 0.10.0
libtpu: 0.0.40
codegen_flags: <defaults>
</compile_context>

<pallas_src>
import functools

import numpy as np
import jax
import jax.numpy as jnp
from jax.experimental import pallas as pl
from jax.experimental.pallas import tpu as pltpu


def _bottleneck_kernel(x_ref, w1t_ref, s1_ref, b1_ref, w2r_ref, s2_ref, b2_ref,
                       cmask_ref, o_ref, col_ref, *, H, W, add, bt):
    """Processes `bt` images per grid step, channels-first (C, H*W) layout.

    x_ref    : (bt, C1, H*W)  input activations (f32)
    w1t_ref  : (Cm, C1)       1x1 conv weight (matmul dtype, e.g. bf16)
    s1/b1    : (Cm, 1)        folded BN1 scale / bias (f32)
    w2r_ref  : (C2, 9*Cm)     3x3 conv weight as im2col matrix (matmul dtype)
    s2/b2    : (C2, 1)        folded BN2 scale / bias (f32)
    cmask_ref: (2, H*W)       column-boundary keep masks (f32, 1=keep / 0=zero)
                              row 0: zero where w == W-1 (source mask for dw = -1)
                              row 1: zero where w == 0   (source mask for dw = +1)
    o_ref    : (bt, C2, H*W)  output
    col_ref  : (9*Cm, H*W)    im2col patch scratch (f32)
    """
    HW = H * W
    Cm = w1t_ref.shape[0]
    mm_dtype = w1t_ref.dtype

    w1t = w1t_ref[...]                                    # (Cm, C1)
    w2r = w2r_ref[...]                                    # (C2, 9*Cm)
    s1 = s1_ref[...]
    b1 = b1_ref[...]
    s2 = s2_ref[...]
    b2 = b2_ref[...]
    mask_m1 = cmask_ref[0:1, :]                           # (1, HW) for dw = -1 taps
    mask_p1 = cmask_ref[1:2, :]                           # (1, HW) for dw = +1 taps

    def shift_hw(a, off):
        # b[:, p] = a[:, p + off] if 0 <= p + off < HW else 0   (lane-axis shift,
        # zero fill handles the top/bottom row boundary of the 3x3 conv).
        if off == 0:
            return a
        pad = jnp.zeros((Cm, abs(off)), a.dtype)
        if off > 0:
            return jnp.concatenate([a[:, off:], pad], axis=1)
        return jnp.concatenate([pad, a[:, :HW + off]], axis=1)

    for b in range(bt):                                   # static unroll over batch fold
        x = x_ref[b]                                      # (C1, HW) f32

        # ---- cv1: 1x1 conv == channel matmul (lane axis = H*W, dense) ----
        y = jnp.dot(w1t, x.astype(mm_dtype),
                    preferred_element_type=jnp.float32)   # (Cm, HW) f32 acc
        y = y * s1 + b1                                   # folded BN1 (f32)
        y = y * jax.nn.sigmoid(y)                         # SiLU (f32)

        # pre-masked source copies per horizontal tap direction; shared across the
        # three vertical taps of each direction (row boundaries handled by shift_hw).
        y_by_dw = {-1: y * mask_m1, 0: y, 1: y * mask_p1}

        # ---- build im2col (9*Cm, HW): tap t = kh*3 + kw samples y[h+kh-1, w+kw-1] ----
        for kh in range(3):
            for kw in range(3):
                t = kh * 3 + kw
                off = (kh - 1) * W + (kw - 1)
                col_ref[t * Cm:(t + 1) * Cm, :] = shift_hw(y_by_dw[kw - 1], off)

        # ---- cv2: 3x3 conv as ONE im2col matmul, K = 9*Cm ----
        z = jnp.dot(w2r, col_ref[...].astype(mm_dtype),
                    preferred_element_type=jnp.float32)   # (C2, HW) f32 acc
        z = z * s2 + b2                                   # folded BN2 (f32)
        z = z * jax.nn.sigmoid(z)                         # SiLU (f32)

        if add:                                           # residual in f32 (C1 == C2)
            z = z + x

        o_ref[b] = z.astype(o_ref.dtype)                  # lane-dense store (HW lanes)


def bottleneck_dsconv(x_nchw, params, *, shortcut=True,
                      matmul_dtype=jnp.bfloat16, max_batch_tile=8,
                      vmem_limit_bytes=None):
    """x_nchw: (N, C1, H, W) float32.  Returns (N, C2, H, W)."""
    w1, s1, b1, w2, s2, b2 = params                       # torch-layout OIHW weights
    N, C1, H, W = x_nchw.shape
    Cm = w1.shape[0]
    C2 = w2.shape[0]
    HW = H * W
    add = bool(shortcut and (C1 == C2))

    # ---- weight / BN prep for the lane-dense (C, H*W) matmul layout ----
    w1t = w1[:, :, 0, 0].astype(matmul_dtype)                             # (Cm, C1)
    # im2col weight: column index = (kh*3 + kw) * Cm + cm
    w2r = jnp.transpose(w2, (0, 2, 3, 1)).reshape(C2, 9 * Cm).astype(matmul_dtype)
    s1c = s1.reshape(Cm, 1).astype(jnp.float32)
    b1c = b1.reshape(Cm, 1).astype(jnp.float32)
    s2c = s2.reshape(C2, 1).astype(jnp.float32)
    b2c = b2.reshape(C2, 1).astype(jnp.float32)

    # host-built column-boundary keep masks (avoids in-kernel integer div/mod):
    wcol = np.arange(HW, dtype=np.int32) % W
    cmask = jnp.asarray(
        np.stack([(wcol != W - 1), (wcol != 0)]).astype(np.float32))      # (2, HW)

    # channels-first, spatially flattened (free reshape of contiguous NCHW)
    x_cf = x_nchw.reshape(N, C1, HW)

    # fold several batch elements per grid step (amortize per-step overhead)
    bt = 1
    for cand in range(min(N, max_batch_tile), 0, -1):
        if N % cand == 0:
            bt = cand
            break

    kernel = functools.partial(_bottleneck_kernel, H=H, W=W, add=add, bt=bt)

    out_cf = pl.pallas_call(
        kernel,
        out_shape=jax.ShapeDtypeStruct((N, C2, HW), x_nchw.dtype),
        grid_spec=pltpu.PrefetchScalarGridSpec(
            num_scalar_prefetch=0,
            grid=(N // bt,),
            in_specs=[
                pl.BlockSpec((bt, C1, HW), lambda n: (n, 0, 0)),
                pl.BlockSpec((Cm, C1), lambda n: (0, 0)),
                pl.BlockSpec((Cm, 1), lambda n: (0, 0)),
                pl.BlockSpec((Cm, 1), lambda n: (0, 0)),
                pl.BlockSpec((C2, 9 * Cm), lambda n: (0, 0)),
                pl.BlockSpec((C2, 1), lambda n: (0, 0)),
                pl.BlockSpec((C2, 1), lambda n: (0, 0)),
                pl.BlockSpec((2, HW), lambda n: (0, 0)),
            ],
            out_specs=pl.BlockSpec((bt, C2, HW), lambda n: (n, 0, 0)),
            scratch_shapes=[
                pltpu.VMEM((9 * Cm, HW), jnp.float32),    # im2col patches
            ],
        ),
        compiler_params=pltpu.CompilerParams(
            dimension_semantics=("parallel",),
            vmem_limit_bytes=vmem_limit_bytes),
    )(x_cf, w1t, s1c, b1c, w2r, s2c, b2c, cmask)

    return out_cf.reshape(N, C2, H, W)


def make_params(key, c1, c2, e=0.5):
    """Deterministic synthetic parameters in torch layout (no checkpoint load)."""
    c_ = int(c2 * e)
    ks = jax.random.split(key, 10)
    eps = 1e-5

    w1 = jax.random.normal(ks[0], (c_, c1, 1, 1), jnp.float32) * 0.2     # OIHW
    w2 = jax.random.normal(ks[1], (c2, c_, 3, 3), jnp.float32) * 0.2     # OIHW

    def bn_fold(kg, kb, km, kv, c):
        gamma = 1.0 + 0.1 * jax.random.normal(kg, (c,), jnp.float32)
        beta = 0.1 * jax.random.normal(kb, (c,), jnp.float32)
        mean = 0.1 * jax.random.normal(km, (c,), jnp.float32)
        var = jnp.abs(jax.random.normal(kv, (c,), jnp.float32)) + 0.5
        scale = gamma / jnp.sqrt(var + eps)
        bias = beta - mean * scale
        return scale, bias

    s1, b1 = bn_fold(ks[2], ks[3], ks[4], ks[5], c_)
    s2, b2 = bn_fold(ks[6], ks[7], ks[8], ks[9], c2)
    return (w1, s1, b1, w2, s2, b2)


def reference_forward(x_nchw, params, *, shortcut=True, matmul_dtype=jnp.float32):
    """Pure-JAX reference using the raw OIHW weights (independent tap indexing)."""
    w1, s1, b1, w2, s2, b2 = params
    N, C1, H, W = x_nchw.shape
    C2 = w2.shape[0]
    x = x_nchw.astype(jnp.float32)

    w1m = w1[:, :, 0, 0].astype(matmul_dtype)
    y = jnp.einsum('oc,nchw->nohw', w1m, x.astype(matmul_dtype),
                   preferred_element_type=jnp.float32)
    y = y * s1[None, :, None, None] + b1[None, :, None, None]
    y = y * jax.nn.sigmoid(y)

    ypad = jnp.pad(y, ((0, 0), (0, 0), (1, 1), (1, 1))).astype(matmul_dtype)
    w2m = w2.astype(matmul_dtype)
    z = jnp.zeros((N, C2, H, W), jnp.float32)
    for kh in range(3):
        for kw in range(3):
            z = z + jnp.einsum('oc,nchw->nohw', w2m[:, :, kh, kw],
                               ypad[:, :, kh:kh + H, kw:kw + W],
                               preferred_element_type=jnp.float32)
    z = z * s2[None, :, None, None] + b2[None, :, None, None]
    z = z * jax.nn.sigmoid(z)
    if shortcut and C1 == C2:
        z = z + x
    return z


if __name__ == "__main__":
    key = jax.random.PRNGKey(0)
    k_x, k_p = jax.random.split(key)

    c1, c2 = 4, 4            # shortcut active since c1 == c2
    N, H, W = 2, 16, 16
    x = jax.random.normal(k_x, (N, c1, H, W), jnp.float32)

    params = make_params(k_p, c1, c2, e=0.5)

    out = bottleneck_dsconv(x, params, shortcut=True)     # bf16 matmuls, f32 BN/SiLU
    out = jax.block_until_ready(out)
    assert out.shape == (N, c2, H, W)

    # tight check vs a reference with identical bf16 cast points
    ref_bf = reference_forward(x, params, shortcut=True, matmul_dtype=jnp.bfloat16)
    err_bf = float(jnp.max(jnp.abs(out - ref_bf)))
    assert jnp.allclose(out, ref_bf, atol=2e-3, rtol=2e-3), \
        f"max err vs bf16-matched reference: {err_bf}"

    # loose cross-check vs the full-f32 reference (guards layout / tap alignment)
    ref_f32 = reference_forward(x, params, shortcut=True, matmul_dtype=jnp.float32)
    err_f32 = float(jnp.max(jnp.abs(out - ref_f32)))
    assert jnp.allclose(out, ref_f32, atol=1e-1, rtol=1e-1), \
        f"max err vs f32 reference: {err_f32}"

    print("KERNEL_OK")
</pallas_src>

<mosaic_0001>
module attributes {stable_mosaic.version = 11 : i64} {
  func.func @_bottleneck_kernel(%arg0: i32, %arg1: memref<2x4x256xf32, #tpu.memory_space<vmem>>, %arg2: memref<2x4xbf16, #tpu.memory_space<vmem>>, %arg3: memref<2x1xf32, #tpu.memory_space<vmem>>, %arg4: memref<2x1xf32, #tpu.memory_space<vmem>>, %arg5: memref<4x18xbf16, #tpu.memory_space<vmem>>, %arg6: memref<4x1xf32, #tpu.memory_space<vmem>>, %arg7: memref<4x1xf32, #tpu.memory_space<vmem>>, %arg8: memref<2x256xf32, #tpu.memory_space<vmem>>, %arg9: memref<2x4x256xf32, #tpu.memory_space<vmem>>, %arg10: memref<18x256xf32, #tpu.memory_space<vmem>>) attributes {dimension_semantics = [#tpu.dimension_semantics<parallel>], iteration_bounds = array<i64: 1>, scalar_prefetch = 0 : i64, scratch_operands = 1 : i64, tpu.core_type = #tpu.core_type<tc>, window_params = [{transform_indices = @transform_0, window_bounds = array<i64: 2, 4, 256>}, {pipeline_mode = #tpu.pipeline_mode<synchronous>, transform_indices = @transform_1, window_bounds = array<i64: 2, 4>}, {pipeline_mode = #tpu.pipeline_mode<synchronous>, transform_indices = @transform_2, window_bounds = array<i64: 2, 1>}, {pipeline_mode = #tpu.pipeline_mode<synchronous>, transform_indices = @transform_3, window_bounds = array<i64: 2, 1>}, {pipeline_mode = #tpu.pipeline_mode<synchronous>, transform_indices = @transform_4, window_bounds = array<i64: 4, 18>}, {pipeline_mode = #tpu.pipeline_mode<synchronous>, transform_indices = @transform_5, window_bounds = array<i64: 4, 1>}, {pipeline_mode = #tpu.pipeline_mode<synchronous>, transform_indices = @transform_6, window_bounds = array<i64: 4, 1>}, {pipeline_mode = #tpu.pipeline_mode<synchronous>, transform_indices = @transform_7, window_bounds = array<i64: 2, 256>}, {transform_indices = @transform_8, window_bounds = array<i64: 2, 4, 256>}]} {
    %c0 = arith.constant 0 : index
    %c0_0 = arith.constant 0 : index
    %0 = vector.load %arg2[%c0, %c0_0] : memref<2x4xbf16, #tpu.memory_space<vmem>>, vector<2x4xbf16>
    %c0_1 = arith.constant 0 : index
    %c0_2 = arith.constant 0 : index
    %1 = vector.load %arg5[%c0_1, %c0_2] : memref<4x18xbf16, #tpu.memory_space<vmem>>, vector<4x18xbf16>
    %c0_3 = arith.constant 0 : index
    %c0_4 = arith.constant 0 : index
    %2 = vector.load %arg3[%c0_3, %c0_4] : memref<2x1xf32, #tpu.memory_space<vmem>>, vector<2x1xf32>
    %c0_5 = arith.constant 0 : index
    %c0_6 = arith.constant 0 : index
    %3 = vector.load %arg4[%c0_5, %c0_6] : memref<2x1xf32, #tpu.memory_space<vmem>>, vector<2x1xf32>
    %c0_7 = arith.constant 0 : index
    %c0_8 = arith.constant 0 : index
    %4 = vector.load %arg6[%c0_7, %c0_8] : memref<4x1xf32, #tpu.memory_space<vmem>>, vector<4x1xf32>
    %c0_9 = arith.constant 0 : index
    %c0_10 = arith.constant 0 : index
    %5 = vector.load %arg7[%c0_9, %c0_10] : memref<4x1xf32, #tpu.memory_space<vmem>>, vector<4x1xf32>
    %c0_11 = arith.constant 0 : index
    %c0_12 = arith.constant 0 : index
    %6 = vector.load %arg8[%c0_11, %c0_12] : memref<2x256xf32, #tpu.memory_space<vmem>>, vector<1x256xf32>
    %c1 = arith.constant 1 : index
    %c0_13 = arith.constant 0 : index
    %7 = vector.load %arg8[%c1, %c0_13] : memref<2x256xf32, #tpu.memory_space<vmem>>, vector<1x256xf32>
    %c0_14 = arith.constant 0 : index
    %c0_15 = arith.constant 0 : index
    %c0_16 = arith.constant 0 : index
    %8 = vector.load %arg1[%c0_14, %c0_15, %c0_16] : memref<2x4x256xf32, #tpu.memory_space<vmem>>, vector<1x4x256xf32>
    %9 = vector.shape_cast %8 : vector<1x4x256xf32> to vector<4x256xf32>
    %10 = arith.truncf %9 : vector<4x256xf32> to vector<4x256xbf16>
    %cst = arith.constant dense<0.000000e+00> : vector<2x256xf32>
    %11 = tpu.matmul %0, %10, %cst {dimension_numbers = #tpu.dot_dimension_numbers<[1], [0], [0], [1], [0, 0, 1, 1], [], []>} : vector<2x4xbf16>, vector<4x256xbf16>, vector<2x256xf32> -> vector<2x256xf32>
    %12 = vector.broadcast %2 : vector<2x1xf32> to vector<2x256xf32>
    %13 = arith.mulf %11, %12 : vector<2x256xf32>
    %14 = vector.broadcast %3 : vector<2x1xf32> to vector<2x256xf32>
    %15 = arith.addf %13, %14 : vector<2x256xf32>
    %16 = arith.negf %15 : vector<2x256xf32>
    %17 = math.exp %16 : vector<2x256xf32>
    %cst_17 = arith.constant 1.000000e+00 : f32
    %18 = vector.broadcast %cst_17 : f32 to vector<2x256xf32>
    %19 = arith.addf %18, %17 : vector<2x256xf32>
    %20 = arith.divf %18, %19 : vector<2x256xf32>
    %21 = arith.mulf %15, %20 : vector<2x256xf32>
    %22 = vector.broadcast %6 : vector<1x256xf32> to vector<2x256xf32>
    %23 = arith.mulf %21, %22 : vector<2x256xf32>
    %24 = vector.broadcast %7 : vector<1x256xf32> to vector<2x256xf32>
    %25 = arith.mulf %21, %24 : vector<2x256xf32>
    %cst_18 = arith.constant 0.000000e+00 : f32
    %26 = vector.broadcast %cst_18 : f32 to vector<2x17xf32>
    %27 = vector.extract_strided_slice %23 {offsets = [0, 0], sizes = [2, 239], strides = [1, 1]} : vector<2x256xf32> to vector<2x239xf32>
    %28 = tpu.concatenate %26, %27 in 1 : vector<2x17xf32>, vector<2x239xf32> -> vector<2x256xf32>
    %c0_19 = arith.constant 0 : index
    %c0_20 = arith.constant 0 : index
    %29 = vector.load %arg10[%c0_19, %c0_20] : memref<18x256xf32, #tpu.memory_space<vmem>>, vector<2x256xf32>
    tpu.vector_store %arg10[%c0_19, %c0_20], %28 {strides = array<i32>} : memref<18x256xf32, #tpu.memory_space<vmem>>, vector<2x256xf32>,
    %cst_21 = arith.constant 0.000000e+00 : f32
    %30 = vector.broadcast %cst_21 : f32 to vector<2x16xf32>
    %31 = vector.extract_strided_slice %21 {offsets = [0, 0], sizes = [2, 240], strides = [1, 1]} : vector<2x256xf32> to vector<2x240xf32>
    %32 = tpu.concatenate %30, %31 in 1 : vector<2x16xf32>, vector<2x240xf32> -> vector<2x256xf32>
    %c2 = arith.constant 2 : index
    %c0_22 = arith.constant 0 : index
    %33 = vector.load %arg10[%c2, %c0_22] : memref<18x256xf32, #tpu.memory_space<vmem>>, vector<2x256xf32>
    tpu.vector_store %arg10[%c2, %c0_22], %32 {strides = array<i32>} : memref<18x256xf32, #tpu.memory_space<vmem>>, vector<2x256xf32>,
    %cst_23 = arith.constant 0.000000e+00 : f32
    %34 = vector.broadcast %cst_23 : f32 to vector<2x15xf32>
    %35 = vector.extract_strided_slice %25 {offsets = [0, 0], sizes = [2, 241], strides = [1, 1]} : vector<2x256xf32> to vector<2x241xf32>
    %36 = tpu.concatenate %34, %35 in 1 : vector<2x15xf32>, vector<2x241xf32> -> vector<2x256xf32>
    %c4 = arith.constant 4 : index
    %c0_24 = arith.constant 0 : index
    %37 = vector.load %arg10[%c4, %c0_24] : memref<18x256xf32, #tpu.memory_space<vmem>>, vector<2x256xf32>
    tpu.vector_store %arg10[%c4, %c0_24], %36 {strides = array<i32>} : memref<18x256xf32, #tpu.memory_space<vmem>>, vector<2x256xf32>,
    %cst_25 = arith.constant 0.000000e+00 : f32
    %38 = vector.broadcast %cst_25 : f32 to vector<2x1xf32>
    %39 = vector.extract_strided_slice %23 {offsets = [0, 0], sizes = [2, 255], strides = [1, 1]} : vector<2x256xf32> to vector<2x255xf32>
    %40 = tpu.concatenate %38, %39 in 1 : vector<2x1xf32>, vector<2x255xf32> -> vector<2x256xf32>
    %c6 = arith.constant 6 : index
    %c0_26 = arith.constant 0 : index
    %41 = vector.load %arg10[%c6, %c0_26] : memref<18x256xf32, #tpu.memory_space<vmem>>, vector<2x256xf32>
    tpu.vector_store %arg10[%c6, %c0_26], %40 {strides = array<i32>} : memref<18x256xf32, #tpu.memory_space<vmem>>, vector<2x256xf32>,
    %c8 = arith.constant 8 : index
    %c0_27 = arith.constant 0 : index
    %42 = vector.load %arg10[%c8, %c0_27] : memref<18x256xf32, #tpu.memory_space<vmem>>, vector<2x256xf32>
    tpu.vector_store %arg10[%c8, %c0_27], %21 {strides = array<i32>} : memref<18x256xf32, #tpu.memory_space<vmem>>, vector<2x256xf32>,
    %cst_28 = arith.constant 0.000000e+00 : f32
    %43 = vector.broadcast %cst_28 : f32 to vector<2x1xf32>
    %44 = vector.extract_strided_slice %25 {offsets = [0, 1], sizes = [2, 255], strides = [1, 1]} : vector<2x256xf32> to vector<2x255xf32>
    %45 = tpu.concatenate %44, %43 in 1 : vector<2x255xf32>, vector<2x1xf32> -> vector<2x256xf32>
    %c10 = arith.constant 10 : index
    %c0_29 = arith.constant 0 : index
    %46 = vector.load %arg10[%c10, %c0_29] : memref<18x256xf32, #tpu.memory_space<vmem>>, vector<2x256xf32>
    tpu.vector_store %arg10[%c10, %c0_29], %45 {strides = array<i32>} : memref<18x256xf32, #tpu.memory_space<vmem>>, vector<2x256xf32>,
    %cst_30 = arith.constant 0.000000e+00 : f32
    %47 = vector.broadcast %cst_30 : f32 to vector<2x15xf32>
    %48 = vector.extract_strided_slice %23 {offsets = [0, 15], sizes = [2, 241], strides = [1, 1]} : vector<2x256xf32> to vector<2x241xf32>
    %49 = tpu.concatenate %48, %47 in 1 : vector<2x241xf32>, vector<2x15xf32> -> vector<2x256xf32>
    %c12 = arith.constant 12 : index
    %c0_31 = arith.constant 0 : index
    %50 = vector.load %arg10[%c12, %c0_31] : memref<18x256xf32, #tpu.memory_space<vmem>>, vector<2x256xf32>
    tpu.vector_store %arg10[%c12, %c0_31], %49 {strides = array<i32>} : memref<18x256xf32, #tpu.memory_space<vmem>>, vector<2x256xf32>,
    %cst_32 = arith.constant 0.000000e+00 : f32
    %51 = vector.broadcast %cst_32 : f32 to vector<2x16xf32>
    %52 = vector.extract_strided_slice %21 {offsets = [0, 16], sizes = [2, 240], strides = [1, 1]} : vector<2x256xf32> to vector<2x240xf32>
    %53 = tpu.concatenate %52, %51 in 1 : vector<2x240xf32>, vector<2x16xf32> -> vector<2x256xf32>
    %c14 = arith.constant 14 : index
    %c0_33 = arith.constant 0 : index
    %54 = vector.load %arg10[%c14, %c0_33] : memref<18x256xf32, #tpu.memory_space<vmem>>, vector<2x256xf32>
    tpu.vector_store %arg10[%c14, %c0_33], %53 {strides = array<i32>} : memref<18x256xf32, #tpu.memory_space<vmem>>, vector<2x256xf32>,
    %cst_34 = arith.constant 0.000000e+00 : f32
    %55 = vector.broadcast %cst_34 : f32 to vector<2x17xf32>
    %56 = vector.extract_strided_slice %25 {offsets = [0, 17], sizes = [2, 239], strides = [1, 1]} : vector<2x256xf32> to vector<2x239xf32>
    %57 = tpu.concatenate %56, %55 in 1 : vector<2x239xf32>, vector<2x17xf32> -> vector<2x256xf32>
    %c16 = arith.constant 16 : index
    %c0_35 = arith.constant 0 : index
    %58 = vector.load %arg10[%c16, %c0_35] : memref<18x256xf32, #tpu.memory_space<vmem>>, vector<2x256xf32>
    tpu.vector_store %arg10[%c16, %c0_35], %57 {strides = array<i32>} : memref<18x256xf32, #tpu.memory_space<vmem>>, vector<2x256xf32>,
    %c0_36 = arith.constant 0 : index
    %c0_37 = arith.constant 0 : index
    %59 = vector.load %arg10[%c0_36, %c0_37] : memref<18x256xf32, #tpu.memory_space<vmem>>, vector<18x256xf32>
    %60 = arith.truncf %59 : vector<18x256xf32> to vector<18x256xbf16>
    %cst_38 = arith.constant dense<0.000000e+00> : vector<4x256xf32>
    %61 = tpu.matmul %1, %60, %cst_38 {dimension_numbers = #tpu.dot_dimension_numbers<[1], [0], [0], [1], [0, 0, 1, 1], [], []>} : vector<4x18xbf16>, vector<18x256xbf16>, vector<4x256xf32> -> vector<4x256xf32>
    %62 = vector.broadcast %4 : vector<4x1xf32> to vector<4x256xf32>
    %63 = arith.mulf %61, %62 : vector<4x256xf32>
    %64 = vector.broadcast %5 : vector<4x1xf32> to vector<4x256xf32>
    %65 = arith.addf %63, %64 : vector<4x256xf32>
    %66 = arith.negf %65 : vector<4x256xf32>
    %67 = math.exp %66 : vector<4x256xf32>
    %cst_39 = arith.constant 1.000000e+00 : f32
    %68 = vector.broadcast %cst_39 : f32 to vector<4x256xf32>
    %69 = arith.addf %68, %67 : vector<4x256xf32>
    %70 = arith.divf %68, %69 : vector<4x256xf32>
    %71 = arith.mulf %65, %70 : vector<4x256xf32>
    %72 = arith.addf %71, %9 : vector<4x256xf32>
    %c0_40 = arith.constant 0 : index
    %c0_41 = arith.constant 0 : index
    %c0_42 = arith.constant 0 : index
    %73 = vector.load %arg9[%c0_40, %c0_41, %c0_42] : memref<2x4x256xf32, #tpu.memory_space<vmem>>, vector<1x4x256xf32>
    %74 = vector.shape_cast %73 : vector<1x4x256xf32> to vector<4x256xf32>
    %75 = vector.shape_cast %72 : vector<4x256xf32> to vector<1x4x256xf32>
    tpu.vector_store %arg9[%c0_40, %c0_41, %c0_42], %75 {strides = array<i32>} : memref<2x4x256xf32, #tpu.memory_space<vmem>>, vector<1x4x256xf32>,
    %c1_43 = arith.constant 1 : index
    %c0_44 = arith.constant 0 : index
    %c0_45 = arith.constant 0 : index
    %76 = vector.load %arg1[%c1_43, %c0_44, %c0_45] : memref<2x4x256xf32, #tpu.memory_space<vmem>>, vector<1x4x256xf32>
    %77 = vector.shape_cast %76 : vector<1x4x256xf32> to vector<4x256xf32>
    %78 = arith.truncf %77 : vector<4x256xf32> to vector<4x256xbf16>
    %cst_46 = arith.constant dense<0.000000e+00> : vector<2x256xf32>
    %79 = tpu.matmul %0, %78, %cst_46 {dimension_numbers = #tpu.dot_dimension_numbers<[1], [0], [0], [1], [0, 0, 1, 1], [], []>} : vector<2x4xbf16>, vector<4x256xbf16>, vector<2x256xf32> -> vector<2x256xf32>
    %80 = vector.broadcast %2 : vector<2x1xf32> to vector<2x256xf32>
    %81 = arith.mulf %79, %80 : vector<2x256xf32>
    %82 = vector.broadcast %3 : vector<2x1xf32> to vector<2x256xf32>
    %83 = arith.addf %81, %82 : vector<2x256xf32>
    %84 = arith.negf %83 : vector<2x256xf32>
    %85 = math.exp %84 : vector<2x256xf32>
    %cst_47 = arith.constant 1.000000e+00 : f32
    %86 = vector.broadcast %cst_47 : f32 to vector<2x256xf32>
    %87 = arith.addf %86, %85 : vector<2x256xf32>
    %88 = arith.divf %86, %87 : vector<2x256xf32>
    %89 = arith.mulf %83, %88 : vector<2x256xf32>
    %90 = vector.broadcast %6 : vector<1x256xf32> to vector<2x256xf32>
    %91 = arith.mulf %89, %90 : vector<2x256xf32>
    %92 = vector.broadcast %7 : vector<1x256xf32> to vector<2x256xf32>
    %93 = arith.mulf %89, %92 : vector<2x256xf32>
    %cst_48 = arith.constant 0.000000e+00 : f32
    %94 = vector.broadcast %cst_48 : f32 to vector<2x17xf32>
    %95 = vector.extract_strided_slice %91 {offsets = [0, 0], sizes = [2, 239], strides = [1, 1]} : vector<2x256xf32> to vector<2x239xf32>
    %96 = tpu.concatenate %94, %95 in 1 : vector<2x17xf32>, vector<2x239xf32> -> vector<2x256xf32>
    %c0_49 = arith.constant 0 : index
    %c0_50 = arith.constant 0 : index
    %97 = vector.load %arg10[%c0_49, %c0_50] : memref<18x256xf32, #tpu.memory_space<vmem>>, vector<2x256xf32>
    tpu.vector_store %arg10[%c0_49, %c0_50], %96 {strides = array<i32>} : memref<18x256xf32, #tpu.memory_space<vmem>>, vector<2x256xf32>,
    %cst_51 = arith.constant 0.000000e+00 : f32
    %98 = vector.broadcast %cst_51 : f32 to vector<2x16xf32>
    %99 = vector.extract_strided_slice %89 {offsets = [0, 0], sizes = [2, 240], strides = [1, 1]} : vector<2x256xf32> to vector<2x240xf32>
    %100 = tpu.concatenate %98, %99 in 1 : vector<2x16xf32>, vector<2x240xf32> -> vector<2x256xf32>
    %c2_52 = arith.constant 2 : index
    %c0_53 = arith.constant 0 : index
    %101 = vector.load %arg10[%c2_52, %c0_53] : memref<18x256xf32, #tpu.memory_space<vmem>>, vector<2x256xf32>
    tpu.vector_store %arg10[%c2_52, %c0_53], %100 {strides = array<i32>} : memref<18x256xf32, #tpu.memory_space<vmem>>, vector<2x256xf32>,
    %cst_54 = arith.constant 0.000000e+00 : f32
    %102 = vector.broadcast %cst_54 : f32 to vector<2x15xf32>
    %103 = vector.extract_strided_slice %93 {offsets = [0, 0], sizes = [2, 241], strides = [1, 1]} : vector<2x256xf32> to vector<2x241xf32>
    %104 = tpu.concatenate %102, %103 in 1 : vector<2x15xf32>, vector<2x241xf32> -> vector<2x256xf32>
    %c4_55 = arith.constant 4 : index
    %c0_56 = arith.constant 0 : index
    %105 = vector.load %arg10[%c4_55, %c0_56] : memref<18x256xf32, #tpu.memory_space<vmem>>, vector<2x256xf32>
    tpu.vector_store %arg10[%c4_55, %c0_56], %104 {strides = array<i32>} : memref<18x256xf32, #tpu.memory_space<vmem>>, vector<2x256xf32>,
    %cst_57 = arith.constant 0.000000e+00 : f32
    %106 = vector.broadcast %cst_57 : f32 to vector<2x1xf32>
    %107 = vector.extract_strided_slice %91 {offsets = [0, 0], sizes = [2, 255], strides = [1, 1]} : vector<2x256xf32> to vector<2x255xf32>
    %108 = tpu.concatenate %106, %107 in 1 : vector<2x1xf32>, vector<2x255xf32> -> vector<2x256xf32>
    %c6_58 = arith.constant 6 : index
    %c0_59 = arith.constant 0 : index
    %109 = vector.load %arg10[%c6_58, %c0_59] : memref<18x256xf32, #tpu.memory_space<vmem>>, vector<2x256xf32>
    tpu.vector_store %arg10[%c6_58, %c0_59], %108 {strides = array<i32>} : memref<18x256xf32, #tpu.memory_space<vmem>>, vector<2x256xf32>,
    %c8_60 = arith.constant 8 : index
    %c0_61 = arith.constant 0 : index
    %110 = vector.load %arg10[%c8_60, %c0_61] : memref<18x256xf32, #tpu.memory_space<vmem>>, vector<2x256xf32>
    tpu.vector_store %arg10[%c8_60, %c0_61], %89 {strides = array<i32>} : memref<18x256xf32, #tpu.memory_space<vmem>>, vector<2x256xf32>,
    %cst_62 = arith.constant 0.000000e+00 : f32
    %111 = vector.broadcast %cst_62 : f32 to vector<2x1xf32>
    %112 = vector.extract_strided_slice %93 {offsets = [0, 1], sizes = [2, 255], strides = [1, 1]} : vector<2x256xf32> to vector<2x255xf32>
    %113 = tpu.concatenate %112, %111 in 1 : vector<2x255xf32>, vector<2x1xf32> -> vector<2x256xf32>
    %c10_63 = arith.constant 10 : index
    %c0_64 = arith.constant 0 : index
    %114 = vector.load %arg10[%c10_63, %c0_64] : memref<18x256xf32, #tpu.memory_space<vmem>>, vector<2x256xf32>
    tpu.vector_store %arg10[%c10_63, %c0_64], %113 {strides = array<i32>} : memref<18x256xf32, #tpu.memory_space<vmem>>, vector<2x256xf32>,
    %cst_65 = arith.constant 0.000000e+00 : f32
    %115 = vector.broadcast %cst_65 : f32 to vector<2x15xf32>
    %116 = vector.extract_strided_slice %91 {offsets = [0, 15], sizes = [2, 241], strides = [1, 1]} : vector<2x256xf32> to vector<2x241xf32>
    %117 = tpu.concatenate %116, %115 in 1 : vector<2x241xf32>, vector<2x15xf32> -> vector<2x256xf32>
    %c12_66 = arith.constant 12 : index
    %c0_67 = arith.constant 0 : index
    %118 = vector.load %arg10[%c12_66, %c0_67] : memref<18x256xf32, #tpu.memory_space<vmem>>, vector<2x256xf32>
    tpu.vector_store %arg10[%c12_66, %c0_67], %117 {strides = array<i32>} : memref<18x256xf32, #tpu.memory_space<vmem>>, vector<2x256xf32>,
    %cst_68 = arith.constant 0.000000e+00 : f32
    %119 = vector.broadcast %cst_68 : f32 to vector<2x16xf32>
    %120 = vector.extract_strided_slice %89 {offsets = [0, 16], sizes = [2, 240], strides = [1, 1]} : vector<2x256xf32> to vector<2x240xf32>
    %121 = tpu.concatenate %120, %119 in 1 : vector<2x240xf32>, vector<2x16xf32> -> vector<2x256xf32>
    %c14_69 = arith.constant 14 : index
    %c0_70 = arith.constant 0 : index
    %122 = vector.load %arg10[%c14_69, %c0_70] : memref<18x256xf32, #tpu.memory_space<vmem>>, vector<2x256xf32>
    tpu.vector_store %arg10[%c14_69, %c0_70], %121 {strides = array<i32>} : memref<18x256xf32, #tpu.memory_space<vmem>>, vector<2x256xf32>,
    %cst_71 = arith.constant 0.000000e+00 : f32
    %123 = vector.broadcast %cst_71 : f32 to vector<2x17xf32>
    %124 = vector.extract_strided_slice %93 {offsets = [0, 17], sizes = [2, 239], strides = [1, 1]} : vector<2x256xf32> to vector<2x239xf32>
    %125 = tpu.concatenate %124, %123 in 1 : vector<2x239xf32>, vector<2x17xf32> -> vector<2x256xf32>
    %c16_72 = arith.constant 16 : index
    %c0_73 = arith.constant 0 : index
    %126 = vector.load %arg10[%c16_72, %c0_73] : memref<18x256xf32, #tpu.memory_space<vmem>>, vector<2x256xf32>
    tpu.vector_store %arg10[%c16_72, %c0_73], %125 {strides = array<i32>} : memref<18x256xf32, #tpu.memory_space<vmem>>, vector<2x256xf32>,
    %c0_74 = arith.constant 0 : index
    %c0_75 = arith.constant 0 : index
    %127 = vector.load %arg10[%c0_74, %c0_75] : memref<18x256xf32, #tpu.memory_space<vmem>>, vector<18x256xf32>
    %128 = arith.truncf %127 : vector<18x256xf32> to vector<18x256xbf16>
    %cst_76 = arith.constant dense<0.000000e+00> : vector<4x256xf32>
    %129 = tpu.matmul %1, %128, %cst_76 {dimension_numbers = #tpu.dot_dimension_numbers<[1], [0], [0], [1], [0, 0, 1, 1], [], []>} : vector<4x18xbf16>, vector<18x256xbf16>, vector<4x256xf32> -> vector<4x256xf32>
    %130 = vector.broadcast %4 : vector<4x1xf32> to vector<4x256xf32>
    %131 = arith.mulf %129, %130 : vector<4x256xf32>
    %132 = vector.broadcast %5 : vector<4x1xf32> to vector<4x256xf32>
    %133 = arith.addf %131, %132 : vector<4x256xf32>
    %134 = arith.negf %133 : vector<4x256xf32>
    %135 = math.exp %134 : vector<4x256xf32>
    %cst_77 = arith.constant 1.000000e+00 : f32
    %136 = vector.broadcast %cst_77 : f32 to vector<4x256xf32>
    %137 = arith.addf %136, %135 : vector<4x256xf32>
    %138 = arith.divf %136, %137 : vector<4x256xf32>
    %139 = arith.mulf %133, %138 : vector<4x256xf32>
    %140 = arith.addf %139, %77 : vector<4x256xf32>
    %c1_78 = arith.constant 1 : index
    %c0_79 = arith.constant 0 : index
    %c0_80 = arith.constant 0 : index
    %141 = vector.load %arg9[%c1_78, %c0_79, %c0_80] : memref<2x4x256xf32, #tpu.memory_space<vmem>>, vector<1x4x256xf32>
    %142 = vector.shape_cast %141 : vector<1x4x256xf32> to vector<4x256xf32>
    %143 = vector.shape_cast %140 : vector<4x256xf32> to vector<1x4x256xf32>
    tpu.vector_store %arg9[%c1_78, %c0_79, %c0_80], %143 {strides = array<i32>} : memref<2x4x256xf32, #tpu.memory_space<vmem>>, vector<1x4x256xf32>,
    return
  }
  func.func @transform_0(%arg0: i32) -> (i32, i32, i32) {
    %c0_i32 = arith.constant 0 : i32
    %c0_i32_0 = arith.constant 0 : i32
    %c0_i32_1 = arith.constant 0 : i32
    return %arg0, %c0_i32, %c0_i32_0 : i32, i32, i32
  }
  func.func @transform_1(%arg0: i32) -> (i32, i32) {
    %c0_i32 = arith.constant 0 : i32
    %c0_i32_0 = arith.constant 0 : i32
    %c0_i32_1 = arith.constant 0 : i32
    return %c0_i32, %c0_i32_0 : i32, i32
  }
  func.func @transform_2(%arg0: i32) -> (i32, i32) {
    %c0_i32 = arith.constant 0 : i32
    %c0_i32_0 = arith.constant 0 : i32
    %c0_i32_1 = arith.constant 0 : i32
    return %c0_i32, %c0_i32_0 : i32, i32
  }
  func.func @transform_3(%arg0: i32) -> (i32, i32) {
    %c0_i32 = arith.constant 0 : i32
    %c0_i32_0 = arith.constant 0 : i32
    %c0_i32_1 = arith.constant 0 : i32
    return %c0_i32, %c0_i32_0 : i32, i32
  }
  func.func @transform_4(%arg0: i32) -> (i32, i32) {
    %c0_i32 = arith.constant 0 : i32
    %c0_i32_0 = arith.constant 0 : i32
    %c0_i32_1 = arith.constant 0 : i32
    return %c0_i32, %c0_i32_0 : i32, i32
  }
  func.func @transform_5(%arg0: i32) -> (i32, i32) {
    %c0_i32 = arith.constant 0 : i32
    %c0_i32_0 = arith.constant 0 : i32
    %c0_i32_1 = arith.constant 0 : i32
    return %c0_i32, %c0_i32_0 : i32, i32
  }
  func.func @transform_6(%arg0: i32) -> (i32, i32) {
    %c0_i32 = arith.constant 0 : i32
    %c0_i32_0 = arith.constant 0 : i32
    %c0_i32_1 = arith.constant 0 : i32
    return %c0_i32, %c0_i32_0 : i32, i32
  }
  func.func @transform_7(%arg0: i32) -> (i32, i32) {
    %c0_i32 = arith.constant 0 : i32
    %c0_i32_0 = arith.constant 0 : i32
    %c0_i32_1 = arith.constant 0 : i32
    return %c0_i32, %c0_i32_0 : i32, i32
  }
  func.func @transform_8(%arg0: i32) -> (i32, i32, i32) {
    %c0_i32 = arith.constant 0 : i32
    %c0_i32_0 = arith.constant 0 : i32
    %c0_i32_1 = arith.constant 0 : i32
    return %arg0, %c0_i32, %c0_i32_0 : i32, i32, i32
  }
}

</mosaic_0001>

<bundles_post_ra>
// kernel: tpu_custom_call.1
= control target key start
LH: loop header
LB: loop body
LE: loop exit
PB: predicated region body
PF: predicated region fallthrough
CT: control target
= control target key end

     0   :  { %13 = vsyncpa [#allocation4], 0  ;;  %s1078_s0 = inlined_call_operand.hbm [shape: f32[2,4,256], index: 0, kind: input, shape index: {}]   ;;  %s1079_s1 = inlined_call_operand.vmem [shape: bf16[2,4], index: 1, kind: input, shape index: {}]   ;;  %s1080_s2 = inlined_call_operand.vmem [shape: f32[2,1], index: 2, kind: input, shape index: {}]   ;;  %s1081_s3 = inlined_call_operand.vmem [shape: f32[2,1], index: 3, kind: input, shape index: {}]   ;;  %s1082_s4 = inlined_call_operand.vmem [shape: bf16[4,18], index: 4, kind: input, shape index: {}]   ;;  %s1083_s5 = inlined_call_operand.vmem [shape: f32[4,1], index: 5, kind: input, shape index: {}]   ;;  %s1084_s6 = inlined_call_operand.vmem [shape: f32[4,1], index: 6, kind: input, shape index: {}]   ;;  %s1085_s7 = inlined_call_operand.vmem [shape: f32[2,256], index: 7, kind: input, shape index: {}]   ;;  %s1086_s8 = inlined_call_operand.hbm [shape: f32[2,4,256], index: 8, kind: output, shape index: {}]  }
   0x1   :  { %14 = vsyncpa [#allocation5], 0  ;;  %s19_s29 = sshll.u32 %s1078_s0, 4  ;;  %s843_s30 = smov [#allocation3]   ;;  %s20_s29 = int_to_ptr.hbm [resolvable:$true] %s19_s29 }
   0x2   :  { %s21_s9 = sshll.u32 %s843_s30, 4  ;;  %s844_s10 = smov 128   ;;  %s22_s9 = int_to_ptr.vmem [resolvable:$true] %s21_s9 }
   0x3   :  { %s845_s11 = smov 8  }
   0x4   :  { %27 = dma.hbm_to_vmem [thread:$0]  %s20_s29, 256, %s22_s9, [#allocation4], %s844_s10, %s844_s10, %s845_s11  }
   0x5   :  { %839 = dma.done.wait [#allocation4], 256  }
   0x6   :  { %840 = vsyncadd [#allocation4], 4294967040  ;;  %v846_v0 = vmov 0   ;;  %v56_v1 = vld [vmem:[#allocation3] sm:$0xff]  ;;  %v49_v2 = vld [vmem:[%s1080_s2] sm:$0x3] }
   0x7   :  { %756 = vset.pattern.permute.xlu0 %v846_v0  ;;  %757 = vset.pattern.permute.xlu1 %v846_v0  ;;  %58 = vst [vmem:[#allocation1] ss:$2 sm:$0xff] %v56_v1  ;;  %v50_v3 = vld [vmem:[%s1081_s3] sm:$0x3]  ;;  %vm69_vm0 = vcmask 1041408   ;;  %vm65_vm1 = vcmask 31744  }
   0x8   :  { %758 = vset.pattern.permute.xlu2 %v846_v0  ;;  %104 = vperm.xlu0 %756, %v49_v2   ;;  %v47_v10 = vld [vmem:[%s1079_s1] sm:$0x1]  ;;  %v936_v57 = vld [vmem:[%s1085_s7 + $0x1] ss:$2 sm:$0x3]  ;;  %s847_s16 = smov 16  }
   0x9   :  { %v406_v11 = vld [vmem:[#allocation3 + $0x8] sm:$0xff]  ;;  %s848_s17 = smov 112   ;;  %s849_s18 = smov 111  }
   0xa   :  { %s850_s21 = smov 15   ;;  %s851_s22 = smov 1  }
   0xb   :  { %s853_s23 = smov 113   ;;  %s854_s24 = smov 17  }
   0xc   :  { %s713_s12 = sshll.u32 %s1086_s8, 4  ;;  %s714_s12 = int_to_ptr.hbm [resolvable:$true] %s713_s12 }
   0xe   :  { %v59_v4 = vld.sshfl [vmem:[#allocation1] sm:$0xff pattern:$0x75316420]  ;;  %v60_v5 = vld.sshfl [vmem:[#allocation1 + $0x8] sm:$0xff pattern:$0x75316420] }
   0xf   :  { %v63_v6 = vpack.c.bf16 %v59_v4, %v59_v4  ;;  %v64_v7 = vpack.c.bf16 %v60_v5, %v60_v5  ;;  %391 = vst [vmem:[#allocation1] ss:$2 sm:$0xff] %v56_v1  ;;  %v165_v1 = vperm.slane %v936_v57, 1 }
  0x10   :  { %111 = vperm.xlu0 %756, %v50_v3  }
  0x11   :  { %v71_v8 = vsel %vm69_vm0, %v63_v6, 0  ;;  %v74_v9 = vsel %vm69_vm0, %v64_v7, 0 }
  0x12   :  { %83 = vmatpush.bf16.msra.mxu0 %v71_v8  ;;  %96 = vmatpush.bf16.msra.mxu1 %v74_v9  ;;  %v164_v9 = vperm.slane %v936_v57, 0 }
  0x15   :  { %727 = vmatmul.msk.bf16.vlgmr.msra.gmra.mxu0 %vm65_vm1, %v47_v10  ;;  %728 = vmatmul.msk.bf16.vlgmr.msra.gmra.mxu1 %vm65_vm1, %v47_v10 }
  0x16   :  { %v920_v12 = vld.sshfl [vmem:[#allocation1] sm:$0xff pattern:$0x75316420]  ;;  %v922_v13 = vld.sshfl [vmem:[#allocation1 + $0x8] sm:$0xff pattern:$0x75316420] }
  0x17   :  { %408 = vst [vmem:[#allocation1] ss:$2 sm:$0xff] %v406_v11 }
  0x1e   :  { %v409_v14 = vld.sshfl [vmem:[#allocation1] sm:$0xff pattern:$0x75316420]  ;;  %v410_v15 = vld.sshfl [vmem:[#allocation1 + $0x8] sm:$0xff pattern:$0x75316420] }
  0x1f   :  { %v413_v16 = vpack.c.bf16 %v409_v14, %v409_v14  ;;  %v414_v17 = vpack.c.bf16 %v410_v15, %v410_v15  ;;  %693 = vst [vmem:[#allocation1] ss:$2 sm:$0xff] %v406_v11 }
  0x21   :  { %v416_v18 = vsel %vm69_vm0, %v413_v16, 0  ;;  %v419_v19 = vsel %vm69_vm0, %v414_v17, 0  ;;  %v53_v16 = vld [vmem:[%s1085_s7] ss:$2 sm:$0x3]  ;;  %s852_s7 = smov 127  }
  0x22   :  { %428 = vmatpush.bf16.msrb.mxu0 %v416_v18  ;;  %441 = vmatpush.bf16.msrb.mxu1 %v419_v19  ;;  %v158_v18 = vperm.slane %v53_v16, 1 }
  0x25   :  { %735 = vmatmul.msk.bf16.vlgmr.msrb.gmra.mxu0 %vm65_vm1, %v47_v10  ;;  %736 = vmatmul.msk.bf16.vlgmr.msrb.gmra.mxu1 %vm65_vm1, %v47_v10 }
  0x7a   :  { %v105_v20 = vpop.permute.xlu0 %104 }
  0x82   :  { %v112_v25 = vpop.permute.xlu0 %111 }
  0x92   :  { %v85_v21 = vpop.f32.mrf.mxu0  ;;  %v98_v22 = vpop.f32.mrf.mxu1 }
  0x93   :  { %v107_v23 = vmul.f32 %v105_v20, %v85_v21  ;;  %v108_v24 = vmul.f32 %v105_v20, %v98_v22 }
  0x95   :  { %v114_v26 = vadd.f32 %v112_v25, %v107_v23  ;;  %v115_v27 = vadd.f32 %v112_v25, %v108_v24  ;;  %v157_v23 = vperm.slane %v53_v16, 0 }
  0x97   :  { %v729_v28 = vmul.f32 -1.442695, %v114_v26  ;;  %v730_v29 = vmul.f32 -1.442695, %v115_v27 }
  0x99   :  { %759 = vpow2.f32 %v729_v28 }
  0x9a   :  { %761 = vpow2.f32 %v730_v29  ;;  %v87_v30 = vpop.f32.mrf.mxu0  ;;  %v100_v31 = vpop.f32.mrf.mxu1 }
  0x9f   :  { %v760_v32 = vpop.eup %759 }
  0xa0   :  { %v762_v33 = vpop.eup %761  ;;  %v122_v34 = vadd.f32 1.0, %v760_v32 }
  0xa1   :  { %v123_v35 = vadd.f32 1.0, %v762_v33 }
  0xa2   :  { %763 = vrcp.f32 %v122_v34  ;;  %v430_v36 = vpop.f32.mrf.mxu0  ;;  %v443_v37 = vpop.f32.mrf.mxu1  ;;  %v135_v49 = vand.u32 2147483648, %v122_v34  ;;  %v133_v53 = vand.u32 2147483647, %v122_v34  ;;  %vm129_vm4 = vweird.f32 %v122_v34 }
  0xa3   :  { %765 = vrcp.f32 %v123_v35  ;;  %v448_v38 = vmul.f32 %v443_v37, %v105_v20  ;;  %v447_v41 = vmul.f32 %v430_v36, %v105_v20  ;;  %v150_v54 = vand.u32 2147483648, %v123_v35 }
  0xa4   :  { %v148_v56 = vand.u32 2147483647, %v123_v35  ;;  %v136_v59 = vor.u32 1.1754944e-38, %v135_v49  ;;  %vm144_vm6 = vweird.f32 %v123_v35  ;;  %vm134_vm7 = vcmp.eq.f32.partialorder %v133_v53, 8.507059e+37 }
  0xa5   :  { %v928_v39 = vadd.f32 %v448_v38, %v112_v25  ;;  %v931_v51 = vadd.f32 %v447_v41, %v112_v25  ;;  %v151_v0 = vor.u32 1.1754944e-38, %v150_v54 }
  0xa6   :  { %vm149_vm9 = vcmp.eq.f32.partialorder %v148_v56, 8.507059e+37 }
  0xa7   :  { %v738_v42 = vmul.f32 -1.442695, %v928_v39  ;;  %v737_v61 = vmul.f32 -1.442695, %v931_v51 }
  0xa8   :  { %v764_v40 = vpop.eup %763 }
  0xa9   :  { %v766_v43 = vpop.eup %765  ;;  %v125_v44 = vmul.f32 %v764_v40, %v122_v34  ;;  %767 = vpow2.f32 %v738_v42  ;;  %vm130_vm2 = vweird.f32 %v764_v40 }
  0xaa   :  { %v140_v45 = vmul.f32 %v766_v43, %v123_v35  ;;  %v445_v46 = vpop.f32.mrf.mxu1  ;;  %v432_v47 = vpop.f32.mrf.mxu0  ;;  %vm145_vm3 = vweird.f32 %v766_v43  ;;  %vm131_vm5 = vmor %vm129_vm4, %vm130_vm2  ;;  %769 = vpow2.f32 %v737_v61  ;;  %vm189_vm2 = vcmask 130048  }
  0xab   :  { %v126_v48 = vsub.f32 1.0, %v125_v44  ;;  %vm146_vm8 = vmor %vm144_vm6, %vm145_vm3  ;;  %vm221_vm3 = vcmask 7168   ;;  %vm268_vm4 = vcmask 916480   ;;  %vm253_vm6 = vcmask 924672  }
  0xac   :  { %v141_v50 = vsub.f32 1.0, %v140_v45 }
  0xad   :  { %v127_v52 = vmul.f32 %v764_v40, %v126_v48 }
  0xae   :  { %v142_v55 = vmul.f32 %v766_v43, %v141_v50 }
  0xaf   :  { %v128_v58 = vadd.f32 %v764_v40, %v127_v52  ;;  %v768_v62 = vpop.eup %767 }
  0xb0   :  { %v143_v60 = vadd.f32 %v766_v43, %v142_v55  ;;  %v458_v4 = vadd.f32 1.0, %v768_v62  ;;  %v770_v10 = vpop.eup %769 }
  0xb1   :  { %v132_v63 = vsel %vm131_vm5, %v764_v40, %v128_v58  ;;  %v457_v15 = vadd.f32 1.0, %v770_v10  ;;  %vm283_vm5 = vcmask 908288  }
  0xb2   :  { %v137_v2 = vsel %vm134_vm7, %v136_v59, %v132_v63  ;;  %v147_v3 = vsel %vm146_vm8, %v766_v43, %v143_v60  ;;  %771 = vrcp.f32 %v458_v4  ;;  %vm479_vm11 = vweird.f32 %v458_v4 }
  0xb3   :  { %v154_v5 = vmul.f32 %v137_v2, %v114_v26  ;;  %v152_v6 = vsel %vm149_vm9, %v151_v0, %v147_v3  ;;  %773 = vrcp.f32 %v457_v15  ;;  %v485_v26 = vand.u32 2147483648, %v458_v4 }
  0xb4   :  { %v155_v7 = vmul.f32 %v152_v6, %v115_v27  ;;  %v483_v28 = vand.u32 2147483647, %v458_v4  ;;  %v470_v36 = vand.u32 2147483648, %v457_v15  ;;  %vm464_vm15 = vweird.f32 %v457_v15 }
  0xb5   :  { %232 = vst [vmem:[#allocation2 + $0x8] sm:$0x3] %v154_v5  ;;  %185 = vrot.lane.b32.xlu2 %v154_v5, %s847_s16  ;;  %v168_v14 = vmul.f32 %v164_v9, %v154_v5  ;;  %v161_v27 = vmul.f32 %v157_v23, %v154_v5  ;;  %v486_v31 = vor.u32 1.1754944e-38, %v485_v26  ;;  %v468_v37 = vand.u32 2147483647, %v457_v15 }
  0xb6   :  { %233 = vst [vmem:[#allocation2] sm:$0x3] %v155_v7  ;;  %266 = vrot.lane.b32.xlu0 %v155_v7, %s848_s17  ;;  %v169_v8 = vmul.f32 %v165_v1, %v155_v7  ;;  %v162_v20 = vmul.f32 %v158_v18, %v155_v7  ;;  %vm484_vm13 = vcmp.eq.f32.partialorder %v483_v28, 8.507059e+37  ;;  %v471_v40 = vor.u32 1.1754944e-38, %v470_v36 }
  0xb7   :  { %vm469_vm1 = vcmp.eq.f32.partialorder %v468_v37, 8.507059e+37  ;;  %vm206_vm7 = vcmask 121856   ;;  %vm304_vm8 = vcmask 1040384   ;;  %vm238_vm9 = vcmask 1039360  }
  0xb8   :  { %281 = vrot.lane.b32.xlu1 %v169_v8, %s849_s18  ;;  %v772_v11 = vpop.eup %771 }
  0xb9   :  { %v475_v17 = vmul.f32 %v772_v11, %v458_v4  ;;  %v774_v22 = vpop.eup %773  ;;  %vm480_vm10 = vweird.f32 %v772_v11 }
  0xba   :  { %v460_v24 = vmul.f32 %v774_v22, %v457_v15  ;;  %vm481_vm12 = vmor %vm479_vm11, %vm480_vm10  ;;  %vm465_vm14 = vweird.f32 %v774_v22  ;;  %vm176_vm10 = vcmask 138240   ;;  %vm300_vm11 = vcmask 146432  }
  0xbb   :  { %v476_v19 = vsub.f32 1.0, %v475_v17  ;;  %vm466_vm0 = vmor %vm464_vm15, %vm465_vm14 }
  0xbc   :  { %v461_v29 = vsub.f32 1.0, %v460_v24 }
  0xbd   :  { %187 = vrot.lane.b32.xlu2 %v155_v7, %s847_s16  ;;  %v477_v21 = vmul.f32 %v772_v11, %v476_v19 }
  0xbe   :  { %202 = vrot.lane.b32.xlu0 %v168_v14, %s850_s21  ;;  %v462_v33 = vmul.f32 %v774_v22, %v461_v29 }
  0xbf   :  { %v478_v25 = vadd.f32 %v772_v11, %v477_v21 }
  0xc0   :  { %279 = vrot.lane.b32.xlu1 %v168_v14, %s849_s18  ;;  %v463_v35 = vadd.f32 %v774_v22, %v462_v33 }
  0xc1   :  { %v482_v30 = vsel %vm481_vm12, %v772_v11, %v478_v25 }
  0xc2   :  { %v487_v32 = vsel %vm484_vm13, %v486_v31, %v482_v30  ;;  %v467_v38 = vsel %vm466_vm0, %v774_v22, %v463_v35 }
  0xc3   :  { %v961_v34 = vmul.f32 %v487_v32, %v928_v39  ;;  %v472_v41 = vsel %vm469_vm1, %v471_v40, %v467_v38  ;;  %v51_v38 = vld [vmem:[%s1083_s5] sm:$0xf] }
  0xc4   :  { %v971_v42 = vmul.f32 %v472_v41, %v931_v51 }
  0xc5   :  { %264 = vrot.lane.b32.xlu2 %v154_v5, %s848_s17  ;;  %v494_v39 = vmul.f32 %v961_v34, %v165_v1  ;;  %v492_v44 = vmul.f32 %v961_v34, %v158_v18 }
  0xc6   :  { %219 = vrot.lane.b32.xlu0 %v162_v20, %s851_s22  ;;  %v491_v43 = vmul.f32 %v971_v42, %v157_v23  ;;  %v493_v45 = vmul.f32 %v971_v42, %v164_v9 }
  0xc8   :  { %204 = vrot.lane.b32.xlu1 %v169_v8, %s850_s21 }
  0xcd   :  { %217 = vrot.lane.b32.xlu2 %v161_v27, %s851_s22 }
  0xce   :  { %234 = vrot.lane.b32.xlu0 %v168_v14, %s852_s7 }
  0xd0   :  { %236 = vrot.lane.b32.xlu1 %v169_v8, %s852_s7 }
  0xd5   :  { %251 = vrot.lane.b32.xlu2 %v162_v20, %s853_s23 }
  0xd6   :  { %511 = vrot.lane.b32.xlu0 %v961_v34, %s847_s16 }
  0xd8   :  { %172 = vrot.lane.b32.xlu1 %v161_v27, %s854_s24 }
  0xdd   :  { %174 = vrot.lane.b32.xlu2 %v162_v20, %s854_s24 }
  0xde   :  { %599 = vrot.lane.b32.xlu0 %v494_v39, %s849_s18 }
  0xe0   :  { %249 = vrot.lane.b32.xlu1 %v161_v27, %s853_s23 }
  0xe5   :  { %509 = vrot.lane.b32.xlu2 %v971_v42, %s847_s16 }
  0xe6   :  { %539 = vrot.lane.b32.xlu0 %v491_v43, %s851_s22 }
  0xe8   :  { %585 = vrot.lane.b32.xlu1 %v961_v34, %s848_s17 }
  0xed   :  { %527 = vrot.lane.b32.xlu2 %v494_v39, %s850_s21 }
  0xee   :  { %571 = vrot.lane.b32.xlu0 %v492_v44, %s853_s23 }
  0xf0   :  { %597 = vrot.lane.b32.xlu1 %v493_v45, %s849_s18 }
  0xf5   :  { %557 = vrot.lane.b32.xlu2 %v494_v39, %s852_s7 }
  0xf6   :  { %499 = vrot.lane.b32.xlu0 %v492_v44, %s854_s24 }
  0xf8   :  { %525 = vrot.lane.b32.xlu1 %v493_v45, %s850_s21 }
  0xfd   :  { %497 = vrot.lane.b32.xlu2 %v491_v43, %s854_s24 }
  0xfe   :  { %583 = vrot.lane.b32.xlu0 %v971_v42, %s848_s17 }
 0x100   :  { %541 = vrot.lane.b32.xlu1 %v492_v44, %s851_s22 }
 0x105   :  { %569 = vrot.lane.b32.xlu2 %v491_v43, %s853_s23 }
 0x108   :  { %555 = vrot.lane.b32.xlu1 %v493_v45, %s852_s7 }
 0x10f   :  { %v186_v46 = vpop.permute.xlu2 %185 }
 0x110   :  { %v192_v47 = vsel %vm189_vm2, 0.0, %v186_v46  ;;  %339 = vperm.xlu1 %757, %v51_v38  }
 0x111   :  { %v194_v48 = vrot.slane %v192_v47, 6 }
 0x113   :  { %198 = vst [vmem:[#allocation2 + $0x28] sm:$0xc] %v194_v48 }
 0x117   :  { %v188_v49 = vpop.permute.xlu2 %187 }
 0x118   :  { %v190_v50 = vsel %vm189_vm2, %v186_v46, %v188_v49 }
 0x119   :  { %v195_v51 = vrot.slane %v190_v50, 6 }
 0x11b   :  { %199 = vst [vmem:[#allocation2 + $0x10] sm:$0xc] %v195_v51 }
 0x11f   :  { %v265_v52 = vpop.permute.xlu2 %264 }
 0x127   :  { %v218_v53 = vpop.permute.xlu2 %217 }
 0x128   :  { %v267_v54 = vpop.permute.xlu0 %266  ;;  %v224_v55 = vsel %vm221_vm3, 0.0, %v218_v53 }
 0x129   :  { %v269_v56 = vsel %vm268_vm4, %v265_v52, %v267_v54  ;;  %v271_v57 = vsel %vm268_vm4, %v267_v54, 0.0  ;;  %v226_v58 = vrot.slane %v224_v55, 2 }
 0x12a   :  { %v273_v59 = vrot.slane %v269_v56, 2  ;;  %v274_v60 = vrot.slane %v271_v57, 2  ;;  %v282_v61 = vpop.permute.xlu1 %281 }
 0x12b   :  { %230 = vst [vmem:[#allocation2 + $0x28] sm:$0xc0] %v226_v58  ;;  %v287_v62 = vsel %vm283_vm5, %v282_v61, 0.0 }
 0x12c   :  { %277 = vst [vmem:[#allocation2 + $0x8] sm:$0xc0] %v273_v59 }
 0x12d   :  { %278 = vst [vmem:[#allocation2] sm:$0xc0] %v274_v60 }
 0x12e   :  { %289 = vst [vmem:[#allocation2 + $0x20] sm:$0x3] %v287_v62 }
 0x12f   :  { %v1000_v63 = vpop.permute.xlu2 %251 }
 0x130   :  { %v203_v0 = vpop.permute.xlu0 %202  ;;  %v256_v1 = vsel %vm253_vm6, %v1000_v63, 0.0 }
 0x131   :  { %v209_v2 = vsel %vm206_vm7, 0.0, %v203_v0  ;;  %v259_v3 = vrot.slane %v256_v1, 4 }
 0x132   :  { %v211_v4 = vrot.slane %v209_v2, 4  ;;  %v280_v5 = vpop.permute.xlu1 %279 }
 0x133   :  { %263 = vst [vmem:[#allocation2] sm:$0x30] %v259_v3  ;;  %v284_v6 = vsel %vm283_vm5, %v280_v5, %v282_v61 }
 0x134   :  { %215 = vst [vmem:[#allocation2 + $0x28] sm:$0x30] %v211_v4 }
 0x135   :  { %288 = vst [vmem:[#allocation2 + $0x18] sm:$0x3] %v284_v6  ;;  %v295_v7 = vld [vmem:[#allocation2 + $0x20] sm:$0x3] }
 0x136   :  { %v299_v8 = vpack.c.bf16 %v295_v7, %v295_v7 }
 0x137   :  { %v175_v9 = vpop.permute.xlu2 %174 }
 0x138   :  { %v309_v10 = vsel %vm304_vm8, %v299_v8, 0  ;;  %v220_v11 = vpop.permute.xlu0 %219 }
 0x139   :  { %330 = vmatpush.bf16.msra.mxu3 %v309_v10  ;;  %v222_v14 = vsel %vm221_vm3, %v218_v53, %v220_v11  ;;  %v1032_v53 = vld [vmem:[%s1082_s4] sm:$0x3] }
 0x13a   :  { %v227_v15 = vrot.slane %v222_v14, 2  ;;  %v205_v16 = vpop.permute.xlu1 %204  ;;  %v52_v11 = vld [vmem:[%s1084_s6] sm:$0xf]  ;;  %s855_s6 = smov [#allocation6]  }
 0x13b   :  { %v207_v17 = vsel %vm206_vm7, %v203_v0, %v205_v16  ;;  %346 = vperm.xlu2 %758, %v52_v11   ;;  %s711_s29 = sshll.u32 %s855_s6, 4  ;;  %s712_s29 = int_to_ptr.vmem [resolvable:$true] %s711_s29 }
 0x13c   :  { %231 = vst [vmem:[#allocation2 + $0x10] sm:$0xc0] %v227_v15  ;;  %v212_v18 = vrot.slane %v207_v17, 4  ;;  %v294_v19 = vld [vmem:[#allocation2 + $0x18] sm:$0x3] }
 0x13d   :  { %v298_v20 = vpack.c.bf16 %v294_v19, %v294_v19 }
 0x13e   :  { %216 = vst [vmem:[#allocation2 + $0x10] sm:$0x30] %v212_v18 }
 0x13f   :  { %v306_v21 = vsel %vm304_vm8, %v298_v20, 0  ;;  %v510_v22 = vpop.permute.xlu2 %509 }
 0x140   :  { %317 = vmatpush.bf16.msra.mxu2 %v306_v21  ;;  %v235_v23 = vpop.permute.xlu0 %234  ;;  %v515_v36 = vsel %vm189_vm2, 0.0, %v510_v22 }
 0x141   :  { %v517_v45 = vrot.slane %v515_v36, 6 }
 0x142   :  { %v237_v24 = vpop.permute.xlu1 %236 }
 0x143   :  { %v239_v25 = vsel %vm238_vm9, %v235_v23, %v237_v24  ;;  %v241_v26 = vsel %vm238_vm9, %v237_v24, 0.0 }
 0x144   :  { %v243_v27 = vrot.slane %v239_v25, 6  ;;  %v244_v28 = vrot.slane %v241_v26, 6 }
 0x146   :  { %247 = vst [vmem:[#allocation2 + $0x8] sm:$0xc] %v243_v27 }
 0x147   :  { %248 = vst [vmem:[#allocation2] sm:$0xc] %v244_v28  ;;  %v1012_v29 = vpop.permute.xlu2 %527 }
 0x148   :  { %v512_v30 = vpop.permute.xlu0 %511 }
 0x149   :  { %v513_v40 = vsel %vm189_vm2, %v510_v22, %v512_v30 }
 0x14a   :  { %v173_v31 = vpop.permute.xlu1 %172  ;;  %v518_v47 = vrot.slane %v513_v40, 6 }
 0x14b   :  { %v177_v32 = vsel %vm176_vm10, %v173_v31, %v175_v9  ;;  %v180_v33 = vsel %vm176_vm10, 0.0, %v173_v31 }
 0x14c   :  { %181 = vst [vmem:[#allocation2 + $0x28] sm:$0x3] %v180_v33 }
 0x14d   :  { %182 = vst [vmem:[#allocation2 + $0x10] sm:$0x3] %v177_v32 }
 0x14e   :  { %v293_v35 = vld [vmem:[#allocation2] sm:$0xff] }
 0x14f   :  { %v1017_v37 = vpop.permute.xlu2 %557  ;;  %554 = vst [vmem:[#allocation2] sm:$0x3] %v961_v34 }
 0x150   :  { %v600_v39 = vpop.permute.xlu0 %599  ;;  %v561_v41 = vsel %vm238_vm9, %v1017_v37, 0.0 }
 0x151   :  { %v604_v43 = vsel %vm283_vm5, %v600_v39, 0.0  ;;  %v564_v44 = vrot.slane %v561_v41, 6 }
 0x152   :  { %606 = vst [vmem:[#allocation2 + $0x20] sm:$0x3] %v604_v43  ;;  %v250_v46 = vpop.permute.xlu1 %249 }
 0x153   :  { %v254_v34 = vsel %vm253_vm6, %v250_v46, %v1000_v63  ;;  %568 = vst [vmem:[#allocation2] sm:$0xc] %v564_v44  ;;  %v290_v48 = vld [vmem:[#allocation2 + $0x28] sm:$0xff] }
 0x154   :  { %v258_v49 = vrot.slane %v254_v34, 4  ;;  %v291_v50 = vld [vmem:[#allocation2 + $0x10] sm:$0xff]  ;;  %521 = vst [vmem:[#allocation2 + $0x28] sm:$0xc] %v517_v45 }
 0x155   :  { %v297_v51 = vpack.c.bf16 %v293_v35, %v291_v50  ;;  %522 = vst [vmem:[#allocation2 + $0x10] sm:$0xc] %v518_v47 }
 0x156   :  { %262 = vst [vmem:[#allocation2 + $0x8] sm:$0x30] %v258_v49 }
 0x157   :  { %331 = vmatpush.bf16.msra.mxu3 %v297_v51  ;;  %v498_v52 = vpop.permute.xlu2 %497 }
 0x158   :  { %v504_v54 = vsel %vm176_vm10, 0.0, %v498_v52  ;;  %v540_v55 = vpop.permute.xlu0 %539 }
 0x159   :  { %505 = vst [vmem:[#allocation2 + $0x28] sm:$0x3] %v504_v54  ;;  %v545_v56 = vsel %vm221_vm3, 0.0, %v540_v55  ;;  %v612_v57 = vld [vmem:[#allocation2 + $0x20] sm:$0x3] }
 0x15a   :  { %v547_v58 = vrot.slane %v545_v56, 2  ;;  %v586_v59 = vpop.permute.xlu1 %585  ;;  %v616_v60 = vpack.c.bf16 %v612_v57, %v612_v57  ;;  %732 = vmatmul.msk.bf16.vlgmr.msra.gmra.mxu3 %vm300_vm11, %v1032_v53 }
 0x15b   :  { %v589_v61 = vsel %vm268_vm4, %v586_v59, 0.0 }
 0x15c   :  { %551 = vst [vmem:[#allocation2 + $0x28] sm:$0xc0] %v547_v58  ;;  %v592_v62 = vrot.slane %v589_v61, 2  ;;  %v621_v63 = vsel %vm304_vm8, %v616_v60, 0 }
 0x15d   :  { %642 = vmatpush.bf16.msrb.mxu3 %v621_v63  ;;  %v292_v0 = vld [vmem:[#allocation2 + $0x8] sm:$0xff] }
 0x15e   :  { %596 = vst [vmem:[#allocation2] sm:$0xc0] %v592_v62  ;;  %v296_v1 = vpack.c.bf16 %v292_v0, %v290_v48 }
 0x15f   :  { %553 = vst [vmem:[#allocation2 + $0x8] sm:$0x3] %v971_v42  ;;  %v570_v2 = vpop.permute.xlu2 %569 }
 0x160   :  { %318 = vmatpush.bf16.msra.mxu2 %v296_v1  ;;  %v572_v3 = vpop.permute.xlu0 %571 }
 0x161   :  { %v573_v4 = vsel %vm253_vm6, %v570_v2, %v572_v3  ;;  %v575_v5 = vsel %vm253_vm6, %v572_v3, 0.0 }
 0x162   :  { %v577_v6 = vrot.slane %v573_v4, 4  ;;  %v578_v7 = vrot.slane %v575_v5, 4  ;;  %v598_v8 = vpop.permute.xlu1 %597 }
 0x163   :  { %v601_v9 = vsel %vm283_vm5, %v598_v8, %v600_v39  ;;  %731 = vmatmul.msk.bf16.vlgmr.msra.gmra.mxu2 %vm300_vm11, %v1032_v53 }
 0x164   :  { %581 = vst [vmem:[#allocation2 + $0x8] sm:$0x30] %v577_v6 }
 0x165   :  { %582 = vst [vmem:[#allocation2] sm:$0x30] %v578_v7 }
 0x166   :  { %605 = vst [vmem:[#allocation2 + $0x18] sm:$0x3] %v601_v9 }
 0x168   :  { %v500_v10 = vpop.permute.xlu0 %499 }
 0x169   :  { %v501_v42 = vsel %vm176_vm10, %v498_v52, %v500_v10 }
 0x16a   :  { %506 = vst [vmem:[#allocation2 + $0x10] sm:$0x3] %v501_v42  ;;  %v526_v14 = vpop.permute.xlu1 %525 }
 0x16b   :  { %v529_v15 = vsel %vm206_vm7, %v526_v14, %v1012_v29  ;;  %v531_v16 = vsel %vm206_vm7, 0.0, %v526_v14 }
 0x16c   :  { %v533_v17 = vrot.slane %v531_v16, 4  ;;  %v534_v18 = vrot.slane %v529_v15, 4  ;;  %v610_v32 = vld [vmem:[#allocation2] sm:$0xff] }
 0x16d   :  { %v611_v19 = vld [vmem:[#allocation2 + $0x18] sm:$0x3] }
 0x16e   :  { %537 = vst [vmem:[#allocation2 + $0x28] sm:$0x30] %v533_v17  ;;  %v615_v20 = vpack.c.bf16 %v611_v19, %v611_v19 }
 0x16f   :  { %538 = vst [vmem:[#allocation2 + $0x10] sm:$0x30] %v534_v18 }
 0x170   :  { %v618_v21 = vsel %vm304_vm8, %v615_v20, 0  ;;  %v584_v22 = vpop.permute.xlu0 %583 }
 0x171   :  { %629 = vmatpush.bf16.msrb.mxu2 %v618_v21  ;;  %v587_v23 = vsel %vm268_vm4, %v584_v22, %v586_v59  ;;  %vm401_vm4 = vcmask 1043456  }
 0x172   :  { %v591_v24 = vrot.slane %v587_v23, 2  ;;  %v542_v25 = vpop.permute.xlu1 %541 }
 0x173   :  { %v543_v26 = vsel %vm221_vm3, %v540_v55, %v542_v25 }
 0x174   :  { %595 = vst [vmem:[#allocation2 + $0x8] sm:$0xc0] %v591_v24  ;;  %v548_v27 = vrot.slane %v543_v26, 2 }
 0x175   :  { %v607_v35 = vld [vmem:[#allocation2 + $0x28] sm:$0xff] }
 0x176   :  { %552 = vst [vmem:[#allocation2 + $0x10] sm:$0xc0] %v548_v27 }
 0x17a   :  { %v556_v28 = vpop.permute.xlu1 %555 }
 0x17b   :  { %v559_v29 = vsel %vm238_vm9, %v556_v28, %v1017_v37 }
 0x17c   :  { %v563_v30 = vrot.slane %v559_v29, 6 }
 0x17d   :  { %v608_v31 = vld [vmem:[#allocation2 + $0x10] sm:$0xff] }
 0x17e   :  { %567 = vst [vmem:[#allocation2 + $0x8] sm:$0xc] %v563_v30  ;;  %v614_v33 = vpack.c.bf16 %v610_v32, %v608_v31 }
 0x180   :  { %643 = vmatpush.bf16.msrb.mxu3 %v614_v33 }
 0x182   :  { %v1062_v40 = vpop.permute.xlu1 %339 }
 0x183   :  { %740 = vmatmul.msk.bf16.vlgmr.msrb.gmra.mxu3 %vm300_vm11, %v1032_v53 }
 0x185   :  { %v609_v36 = vld [vmem:[#allocation2 + $0x8] sm:$0xff] }
 0x186   :  { %v613_v38 = vpack.c.bf16 %v609_v36, %v607_v35 }
 0x188   :  { %630 = vmatpush.bf16.msrb.mxu2 %v613_v38 }
 0x18b   :  { %739 = vmatmul.msk.bf16.vlgmr.msrb.gmra.mxu2 %vm300_vm11, %v1032_v53 }
 0x195   :  { %v347_v37 = vpop.permute.xlu2 %346 }
 0x1dd   :  { %v333_v39 = vpop.f32.mrf.mxu3 }
 0x1de   :  { %v343_v41 = vmul.f32 %v1062_v40, %v333_v39 }
 0x1e0   :  { %v350_v43 = vadd.f32 %v347_v37, %v343_v41 }
 0x1e2   :  { %v734_v44 = vmul.f32 -1.442695, %v350_v43 }
 0x1e4   :  { %775 = vpow2.f32 %v734_v44 }
 0x1e5   :  { %v335_v45 = vpop.f32.mrf.mxu3 }
 0x1e6   :  { %v320_v46 = vpop.f32.mrf.mxu2 }
 0x1e7   :  { %v342_v47 = vmul.f32 %v1062_v40, %v320_v46 }
 0x1e9   :  { %v349_v34 = vadd.f32 %v347_v37, %v342_v47 }
 0x1ea   :  { %v776_v48 = vpop.eup %775 }
 0x1eb   :  { %v733_v49 = vmul.f32 -1.442695, %v349_v34  ;;  %v358_v50 = vadd.f32 1.0, %v776_v48 }
 0x1ed   :  { %777 = vpow2.f32 %v733_v49  ;;  %v385_v56 = vand.u32 2147483648, %v358_v50  ;;  %vm379_vm12 = vweird.f32 %v358_v50  ;;  %v383_v58 = vand.u32 2147483647, %v358_v50 }
 0x1ee   :  { %779 = vrcp.f32 %v358_v50  ;;  %v322_v51 = vpop.f32.mrf.mxu2 }
 0x1ef   :  { %v386_v60 = vor.u32 1.1754944e-38, %v385_v56  ;;  %vm384_vm15 = vcmp.eq.f32.partialorder %v383_v58, 8.507059e+37 }
 0x1f3   :  { %v778_v52 = vpop.eup %777 }
 0x1f4   :  { %v780_v53 = vpop.eup %779  ;;  %v357_v54 = vadd.f32 1.0, %v778_v52 }
 0x1f5   :  { %v375_v55 = vmul.f32 %v780_v53, %v358_v50  ;;  %vm380_vm13 = vweird.f32 %v780_v53 }
 0x1f6   :  { %781 = vrcp.f32 %v357_v54  ;;  %vm381_vm14 = vmor %vm379_vm12, %vm380_vm13  ;;  %v370_v1 = vand.u32 2147483648, %v357_v54  ;;  %vm364_vm0 = vweird.f32 %v357_v54  ;;  %v368_v4 = vand.u32 2147483647, %v357_v54 }
 0x1f7   :  { %v376_v57 = vsub.f32 1.0, %v375_v55 }
 0x1f8   :  { %v371_v7 = vor.u32 1.1754944e-38, %v370_v1  ;;  %vm369_vm3 = vcmp.eq.f32.partialorder %v368_v4, 8.507059e+37 }
 0x1f9   :  { %v377_v59 = vmul.f32 %v780_v53, %v376_v57 }
 0x1fb   :  { %v378_v61 = vadd.f32 %v780_v53, %v377_v59 }
 0x1fc   :  { %v782_v62 = vpop.eup %781 }
 0x1fd   :  { %v360_v63 = vmul.f32 %v782_v62, %v357_v54  ;;  %v382_v0 = vsel %vm381_vm14, %v780_v53, %v378_v61  ;;  %vm365_vm1 = vweird.f32 %v782_v62  ;;  %v694_v53 = vld.sshfl [vmem:[#allocation1] sm:$0xff pattern:$0x75316420] }
 0x1fe   :  { %v387_v2 = vsel %vm384_vm15, %v386_v60, %v382_v0  ;;  %vm366_vm2 = vmor %vm364_vm0, %vm365_vm1 }
 0x1ff   :  { %v361_v3 = vsub.f32 1.0, %v360_v63  ;;  %v390_v6 = vmul.f32 %v387_v2, %v350_v43 }
 0x201   :  { %v362_v5 = vmul.f32 %v782_v62, %v361_v3  ;;  %v397_v10 = vadd.f32 %v922_v13, %v390_v6 }
 0x203   :  { %v363_v8 = vadd.f32 %v782_v62, %v362_v5  ;;  %v400_v17 = vrot.slane %v397_v10, 4 }
 0x205   :  { %v367_v9 = vsel %vm366_vm2, %v782_v62, %v363_v8 }
 0x206   :  { %v372_v42 = vsel %vm369_vm3, %v371_v7, %v367_v9  ;;  %v645_v11 = vpop.f32.mrf.mxu3 }
 0x207   :  { %v389_v14 = vmul.f32 %v372_v42, %v349_v34  ;;  %v650_v15 = vmul.f32 %v645_v11, %v1062_v40  ;;  %v695_v34 = vld.sshfl [vmem:[#allocation1 + $0x8] sm:$0xff pattern:$0x75316420] }
 0x209   :  { %v396_v16 = vadd.f32 %v920_v12, %v389_v14  ;;  %v652_v18 = vadd.f32 %v650_v15, %v347_v37 }
 0x20b   :  { %v742_v19 = vmul.f32 -1.442695, %v652_v18  ;;  %v402_v20 = vsel %vm401_vm4, %v396_v16, %v400_v17 }
 0x20c   :  { %404 = vst [vmem:[#allocation6] sm:$0xff] %v402_v20 }
 0x20d   :  { %783 = vpow2.f32 %v742_v19 }
 0x20e   :  { %v632_v21 = vpop.f32.mrf.mxu2  ;;  %v647_v22 = vpop.f32.mrf.mxu3 }
 0x20f   :  { %v649_v23 = vmul.f32 %v632_v21, %v1062_v40 }
 0x211   :  { %v651_v13 = vadd.f32 %v649_v23, %v347_v37 }
 0x213   :  { %v784_v24 = vpop.eup %783  ;;  %v741_v25 = vmul.f32 -1.442695, %v651_v13 }
 0x214   :  { %v660_v26 = vadd.f32 1.0, %v784_v24 }
 0x215   :  { %785 = vpow2.f32 %v741_v25 }
 0x216   :  { %787 = vrcp.f32 %v660_v26  ;;  %v634_v27 = vpop.f32.mrf.mxu2  ;;  %v687_v32 = vand.u32 2147483648, %v660_v26  ;;  %vm681_vm5 = vweird.f32 %v660_v26  ;;  %v685_v35 = vand.u32 2147483647, %v660_v26 }
 0x218   :  { %v688_v40 = vor.u32 1.1754944e-38, %v687_v32  ;;  %vm686_vm8 = vcmp.eq.f32.partialorder %v685_v35, 8.507059e+37 }
 0x21b   :  { %v786_v28 = vpop.eup %785 }
 0x21c   :  { %v788_v12 = vpop.eup %787  ;;  %v659_v29 = vadd.f32 1.0, %v786_v28 }
 0x21d   :  { %v677_v30 = vmul.f32 %v788_v12, %v660_v26  ;;  %vm682_vm6 = vweird.f32 %v788_v12 }
 0x21e   :  { %789 = vrcp.f32 %v659_v29  ;;  %vm683_vm7 = vmor %vm681_vm5, %vm682_vm6  ;;  %v672_v44 = vand.u32 2147483648, %v659_v29  ;;  %v670_v47 = vand.u32 2147483647, %v659_v29  ;;  %vm666_vm10 = vweird.f32 %v659_v29 }
 0x21f   :  { %v678_v31 = vsub.f32 1.0, %v677_v30 }
 0x220   :  { %v673_v49 = vor.u32 1.1754944e-38, %v672_v44  ;;  %vm671_vm12 = vcmp.eq.f32.partialorder %v670_v47, 8.507059e+37 }
 0x221   :  { %v679_v33 = vmul.f32 %v788_v12, %v678_v31 }
 0x223   :  { %v680_v36 = vadd.f32 %v788_v12, %v679_v33 }
 0x224   :  { %v790_v38 = vpop.eup %789 }
 0x225   :  { %v684_v39 = vsel %vm683_vm7, %v788_v12, %v680_v36  ;;  %v662_v37 = vmul.f32 %v790_v38, %v659_v29  ;;  %vm667_vm9 = vweird.f32 %v790_v38 }
 0x226   :  { %v689_v41 = vsel %vm686_vm8, %v688_v40, %v684_v39  ;;  %vm668_vm11 = vmor %vm666_vm10, %vm667_vm9 }
 0x227   :  { %v663_v43 = vsub.f32 1.0, %v662_v37  ;;  %v692_v45 = vmul.f32 %v689_v41, %v652_v18 }
 0x229   :  { %v664_v46 = vmul.f32 %v790_v38, %v663_v43  ;;  %v699_v50 = vadd.f32 %v695_v34, %v692_v45 }
 0x22b   :  { %v665_v48 = vadd.f32 %v790_v38, %v664_v46  ;;  %v702_v55 = vrot.slane %v699_v50, 4 }
 0x22d   :  { %v669_v51 = vsel %vm668_vm11, %v790_v38, %v665_v48 }
 0x22e   :  { %v674_v52 = vsel %vm671_vm12, %v673_v49, %v669_v51 }
 0x22f   :  { %v691_v54 = vmul.f32 %v674_v52, %v651_v13 }
 0x231   :  { %v698_v56 = vadd.f32 %v694_v53, %v691_v54 }
 0x233   :  { %v703_v57 = vsel %vm401_vm4, %v698_v56, %v702_v55 }
 0x234   :  { %706 = vst [vmem:[#allocation6 + $0x8] sm:$0xff] %v703_v57 }
 0x235   :  { %719 = dma.vmem_to_hbm [thread:$0]  %s712_s29, 256, %s714_s12, [#allocation5], %s844_s10, %s844_s10, %s845_s11  }
 0x236   :  { %841 = dma.done.wait [#allocation5], 256  }
 0x237   :  { %842 = vsyncadd [#allocation5], 4294967040 }
 0x238   :  { %724 = vsyncpa [#allocation4], 1 }
 0x239   :  { %725 = vsyncpa [#allocation5], 1 }

</bundles_post_ra>
